<compile_context>
chip_gen: v5e
topology: v5e:2x2
jax: 0.10.0
libtpu: 0.0.40
codegen_flags: <defaults>
</compile_context>

<pallas_src>
import jax
import jax.numpy as jnp
from jax.experimental import pallas as pl
from jax.experimental.pallas import tpu as pltpu

_LANE = 128        # lane width of a vreg
_SUBLANE = 8       # sublane count of a vreg (f32)
_NEG_BIG = -1e30   # bias for padded output columns -> exp() underflows to exactly 0
_SINGLE_BUFFER_MIN_BYTES = 1 << 20   # only single-buffer resident blocks that are big enough to matter


def _round_up(x: int, m: int) -> int:
    return ((x + m - 1) // m) * m


def _vmem_capacity_bytes() -> int:
    """Per-core VMEM capacity; conservative 64 MiB (v7x per-TC) if the query fails."""
    try:
        return int(pltpu.get_tpu_info().vmem_capacity_bytes)
    except Exception:
        return 64 * 1024 * 1024


def _resident_spec(block_shape, index_map, nbytes):
    """BlockSpec for a block whose index_map is constant (fetched once, never refetched).

    Large blocks request single buffering (pl.Buffered(1)) so the resident weight is not
    held twice in VMEM; small blocks keep the default (negligible cost, and older JAX may
    lack pipeline_mode)."""
    if nbytes >= _SINGLE_BUFFER_MIN_BYTES:
        try:
            return pl.BlockSpec(block_shape, index_map, pipeline_mode=pl.Buffered(1))
        except Exception:
            pass
    return pl.BlockSpec(block_shape, index_map)


def _corr_score_kernel(x_ref, w_ref, b_ref, o_ref):
    """x: (tb, din_p) f32; w: (din_p, dout_p) f32 (pre-transposed); b: (1, dout_p) f32."""
    logits = jnp.dot(x_ref[...], w_ref[...], preferred_element_type=jnp.float32)
    logits = logits + b_ref[...]
    # Numerically stable log_softmax along the class axis.  Padded columns carry a -1e30
    # bias, so they never win the max and contribute exactly 0 to the sum.
    m = jnp.max(logits, axis=-1, keepdims=True)
    shifted = logits - m
    lse = jnp.log(jnp.sum(jnp.exp(shifted), axis=-1, keepdims=True))
    o_ref[...] = shifted - lse


def _corr_score_kernel_ktiled(x_ref, w_ref, b_ref, o_ref, acc_ref):
    """Contraction-tiled variant: grid = (batch, k); f32 accumulator scratch in VMEM."""
    k = pl.program_id(1)

    @pl.when(k == 0)
    def _():
        acc_ref[...] = jnp.zeros_like(acc_ref)

    acc_ref[...] += jnp.dot(x_ref[...], w_ref[...], preferred_element_type=jnp.float32)

    @pl.when(k == pl.num_programs(1) - 1)
    def _():
        logits = acc_ref[...] + b_ref[...]
        m = jnp.max(logits, axis=-1, keepdims=True)
        shifted = logits - m
        lse = jnp.log(jnp.sum(jnp.exp(shifted), axis=-1, keepdims=True))
        o_ref[...] = shifted - lse


class CorrScore:
    """JAX/Pallas port of CorrScoreModel: log_softmax(x @ W.T + b, dim=1), all f32."""

    def __init__(self, weight, bias, *, block_b: int = 1024):
        weight = jnp.asarray(weight, jnp.float32)   # (dim_out, dim_in), nn.Linear layout
        bias = jnp.asarray(bias, jnp.float32)       # (dim_out,)
        self.dim_out, self.dim_in = int(weight.shape[0]), int(weight.shape[1])
        self.din_p = _round_up(self.dim_in, _LANE)
        self.dout_p = _round_up(self.dim_out, _LANE)
        self.block_b = block_b

        # Hoisted out of forward: pre-transposed, zero-padded weight (zeros contribute 0
        # to the dot) and the bias padded with -1e30 on the fake output columns.
        w_p = jnp.zeros((self.din_p, self.dout_p), jnp.float32)
        w_p = w_p.at[: self.dim_in, : self.dim_out].set(weight.T)
        b_p = jnp.full((1, self.dout_p), _NEG_BIG, jnp.float32)
        b_p = b_p.at[0, : self.dim_out].set(bias)
        self.w_p = jax.block_until_ready(w_p)
        self.b_p = jax.block_until_ready(b_p)

        # Per-generation VMEM budget: 0.8 * capacity, capped at 100 MiB
        # (v5e/v6e: 128 MiB -> 100 MiB; v7x: 64 MiB/TC -> ~51 MiB), minus headroom.
        cap = _vmem_capacity_bytes()
        self.vmem_limit = min(int(cap * 0.8), 100 * 1024 * 1024)
        self.vmem_budget = self.vmem_limit - (2 << 20)

    # ---- helpers -------------------------------------------------------------------

    def _pick_block_k(self, requested):
        """Largest multiple of 128 that divides din_p and respects `requested` / budget."""
        din_p, dout_p = self.din_p, self.dout_p
        m = din_p // _LANE
        if requested is None:
            # leave at least half the budget for x / out / acc blocks
            target = max(_LANE, (self.vmem_budget // 2) // (2 * dout_p * 4))
        else:
            target = max(_LANE, int(requested))
        for d in range(m, 0, -1):
            if m % d == 0 and d * _LANE <= target:
                return d * _LANE
        return _LANE

    # ---- forward -------------------------------------------------------------------

    def __call__(self, feature, *, block_b=None, block_k=None):
        x = jnp.asarray(feature, jnp.float32).reshape(-1, self.dim_in)
        B = int(x.shape[0])
        din_p, dout_p = self.din_p, self.dout_p

        # Lane-pad the contraction dim with zeros.  No batch padding (ragged last block
        # is handled by the pipeline).
        if din_p != self.dim_in:
            x = jnp.pad(x, ((0, 0), (0, din_p - self.dim_in)))

        req_tb = self.block_b if block_b is None else int(block_b)
        tb_cap = min(_round_up(max(req_tb, _SUBLANE), _SUBLANE), _round_up(B, _SUBLANE))

        w_bytes = din_p * dout_p * 4
        bias_bytes = 2 * dout_p * 4

        # Resident-weight path budget (weight counted twice in case single buffering is
        # unavailable): 2 x-blocks + 2 out-blocks + weight + bias.
        def _max_tb_resident():
            avail = self.vmem_budget - 2 * w_bytes - bias_bytes
            return (avail // (2 * (din_p + dout_p) * 4)) if avail > 0 else 0

        use_resident = block_k is None and _max_tb_resident() >= _SUBLANE

        if use_resident:
            tb = min(tb_cap, max(_SUBLANE, (_max_tb_resident() // _SUBLANE) * _SUBLANE))
            grid = (pl.cdiv(B, tb),)
            out_p = pl.pallas_call(
                _corr_score_kernel,
                out_shape=jax.ShapeDtypeStruct((B, dout_p), jnp.float32),
                grid_spec=pltpu.PrefetchScalarGridSpec(
                    num_scalar_prefetch=0,
                    grid=grid,
                    in_specs=[
                        pl.BlockSpec((tb, din_p), lambda i: (i, 0)),
                        _resident_spec((din_p, dout_p), lambda i: (0, 0), w_bytes),
                        _resident_spec((1, dout_p), lambda i: (0, 0), dout_p * 4),
                    ],
                    out_specs=pl.BlockSpec((tb, dout_p), lambda i: (i, 0)),
                ),
                compiler_params=pltpu.CompilerParams(
                    dimension_semantics=("parallel",),
                    vmem_limit_bytes=self.vmem_limit,
                ),
            )(x, self.w_p, self.b_p)
        else:
            # Contraction-tiled fallback: grid = (batch, k), weight streamed in
            # (bk, dout_p) slabs, f32 accumulator scratch, log_softmax on the last k step.
            bk = self._pick_block_k(block_k)
            avail = self.vmem_budget - 2 * bk * dout_p * 4 - bias_bytes
            tb_fit = max(_SUBLANE, (avail // ((2 * bk + 3 * dout_p) * 4)) if avail > 0 else _SUBLANE)
            tb = min(tb_cap, (tb_fit // _SUBLANE) * _SUBLANE)
            tb = max(tb, _SUBLANE)
            grid = (pl.cdiv(B, tb), din_p // bk)
            out_p = pl.pallas_call(
                _corr_score_kernel_ktiled,
                out_shape=jax.ShapeDtypeStruct((B, dout_p), jnp.float32),
                grid_spec=pltpu.PrefetchScalarGridSpec(
                    num_scalar_prefetch=0,
                    grid=grid,
                    in_specs=[
                        pl.BlockSpec((tb, bk), lambda i, k: (i, k)),
                        pl.BlockSpec((bk, dout_p), lambda i, k: (k, 0)),
                        _resident_spec((1, dout_p), lambda i, k: (0, 0), dout_p * 4),
                    ],
                    out_specs=pl.BlockSpec((tb, dout_p), lambda i, k: (i, 0)),
                    scratch_shapes=[pltpu.VMEM((tb, dout_p), jnp.float32)],
                ),
                compiler_params=pltpu.CompilerParams(
                    dimension_semantics=("parallel", "arbitrary"),
                    vmem_limit_bytes=self.vmem_limit,
                ),
            )(x, self.w_p, self.b_p)

        # Drop only the padded output columns (no batch slice needed).
        if dout_p != self.dim_out:
            out_p = out_p[:, : self.dim_out]
        return out_p


def _reference(feature, weight, bias):
    logits = feature @ weight.T + bias
    return jax.nn.log_softmax(logits, axis=1)


if __name__ == "__main__":
    key = jax.random.PRNGKey(0)
    k_w, k_b, k_x1, k_x2, k_w3, k_b3, k_x3 = jax.random.split(key, 7)

    # ---- Module defaults: dim_in=3, dim_out=2 (nn.Linear init: U(+-1/sqrt(dim_in))) ----
    dim_in, dim_out = 3, 2
    bound = 1.0 / (dim_in ** 0.5)
    weight = jax.random.uniform(k_w, (dim_out, dim_in), jnp.float32, -bound, bound)
    bias = jax.random.uniform(k_b, (dim_out,), jnp.float32, -bound, bound)
    model = CorrScore(weight, bias)

    # 1) Tiny batch -> single-block resident-weight path (grid of one).
    feat1 = jax.random.normal(k_x1, (8, dim_in), jnp.float32)
    out1 = jax.block_until_ready(model(feat1))
    ref1 = _reference(feat1, weight, bias)
    assert out1.shape == (8, dim_out)
    assert jnp.allclose(out1, ref1, atol=1e-5, rtol=1e-5), "mismatch (single-block path)"

    # 2) Larger batch, not divisible by the tile -> ragged last batch block (600 = 2*256 + 88).
    feat2 = jax.random.normal(k_x2, (600, dim_in), jnp.float32)
    out2 = jax.block_until_ready(model(feat2, block_b=256))
    ref2 = _reference(feat2, weight, bias)
    assert out2.shape == (600, dim_out)
    assert jnp.allclose(out2, ref2, atol=1e-5, rtol=1e-5), "mismatch (ragged batch path)"

    # 3) Contraction-tiled (K grid axis + accumulator) path, odd batch, padded dout.
    #    Looser tolerance: the kernel's MXU matmul and the XLA reference matmul may use
    #    different f32 precision paths; real bugs show up at >= 1e-1 scale here.
    dim_in3, dim_out3 = 384, 130
    bound3 = 1.0 / (dim_in3 ** 0.5)
    weight3 = jax.random.uniform(k_w3, (dim_out3, dim_in3), jnp.float32, -bound3, bound3)
    bias3 = jax.random.uniform(k_b3, (dim_out3,), jnp.float32, -bound3, bound3)
    model3 = CorrScore(weight3, bias3)
    feat3 = jax.random.normal(k_x3, (100, dim_in3), jnp.float32)
    out3 = jax.block_until_ready(model3(feat3, block_k=128))
    ref3 = _reference(feat3, weight3, bias3)
    assert out3.shape == (100, dim_out3)
    assert jnp.allclose(out3, ref3, atol=2e-2, rtol=2e-3), "mismatch (k-tiled path)"

    print("KERNEL_OK")
</pallas_src>

<mosaic_0001>
module attributes {stable_mosaic.version = 11 : i64} {
  func.func @_corr_score_kernel(%arg0: i32, %arg1: memref<8x128xf32, #tpu.memory_space<vmem>>, %arg2: memref<128x128xf32, #tpu.memory_space<vmem>>, %arg3: memref<1x128xf32, #tpu.memory_space<vmem>>, %arg4: memref<8x128xf32, #tpu.memory_space<vmem>>) attributes {dimension_semantics = [#tpu.dimension_semantics<parallel>], iteration_bounds = array<i64: 1>, scalar_prefetch = 0 : i64, scratch_operands = 0 : i64, tpu.core_type = #tpu.core_type<tc>, window_params = [{transform_indices = @transform_0, window_bounds = array<i64: 8, 128>}, {pipeline_mode = #tpu.pipeline_mode<synchronous>, transform_indices = @transform_1, window_bounds = array<i64: 128, 128>}, {pipeline_mode = #tpu.pipeline_mode<synchronous>, transform_indices = @transform_2, window_bounds = array<i64: 1, 128>}, {transform_indices = @transform_3, window_bounds = array<i64: 8, 128>}]} {
    %c0 = arith.constant 0 : index
    %c0_0 = arith.constant 0 : index
    %0 = vector.load %arg1[%c0, %c0_0] : memref<8x128xf32, #tpu.memory_space<vmem>>, vector<8x128xf32>
    %c0_1 = arith.constant 0 : index
    %c0_2 = arith.constant 0 : index
    %1 = vector.load %arg2[%c0_1, %c0_2] : memref<128x128xf32, #tpu.memory_space<vmem>>, vector<128x128xf32>
    %cst = arith.constant dense<0.000000e+00> : vector<8x128xf32>
    %2 = tpu.matmul %0, %1, %cst {dimension_numbers = #tpu.dot_dimension_numbers<[1], [0], [0], [1], [0, 0, 1, 1], [], []>} : vector<8x128xf32>, vector<128x128xf32>, vector<8x128xf32> -> vector<8x128xf32>
    %c0_3 = arith.constant 0 : index
    %c0_4 = arith.constant 0 : index
    %3 = vector.load %arg3[%c0_3, %c0_4] : memref<1x128xf32, #tpu.memory_space<vmem>>, vector<1x128xf32>
    %4 = vector.broadcast %3 : vector<1x128xf32> to vector<8x128xf32>
    %5 = arith.addf %2, %4 : vector<8x128xf32>
    %cst_5 = arith.constant dense<0xFF800000> : vector<8xf32>
    %6 = vector.multi_reduction <maximumf>, %5, %cst_5 [1] : vector<8x128xf32> to vector<8xf32>
    %7 = vector.shape_cast %6 : vector<8xf32> to vector<8x1xf32>
    %8 = vector.broadcast %7 : vector<8x1xf32> to vector<8x128xf32>
    %9 = arith.subf %5, %8 : vector<8x128xf32>
    %10 = math.exp %9 : vector<8x128xf32>
    %cst_6 = arith.constant dense<0.000000e+00> : vector<8xf32>
    %11 = vector.multi_reduction <add>, %10, %cst_6 [1] : vector<8x128xf32> to vector<8xf32>
    %12 = vector.shape_cast %11 : vector<8xf32> to vector<8x1xf32>
    %13 = math.log %12 : vector<8x1xf32>
    %14 = vector.broadcast %13 : vector<8x1xf32> to vector<8x128xf32>
    %15 = arith.subf %9, %14 : vector<8x128xf32>
    %c0_7 = arith.constant 0 : index
    %c0_8 = arith.constant 0 : index
    %16 = vector.load %arg4[%c0_7, %c0_8] : memref<8x128xf32, #tpu.memory_space<vmem>>, vector<8x128xf32>
    tpu.vector_store %arg4[%c0_7, %c0_8], %15 {strides = array<i32>} : memref<8x128xf32, #tpu.memory_space<vmem>>, vector<8x128xf32>,
    return
  }
  func.func @transform_0(%arg0: i32) -> (i32, i32) {
    %c0_i32 = arith.constant 0 : i32
    %c0_i32_0 = arith.constant 0 : i32
    return %arg0, %c0_i32 : i32, i32
  }
  func.func @transform_1(%arg0: i32) -> (i32, i32) {
    %c0_i32 = arith.constant 0 : i32
    %c0_i32_0 = arith.constant 0 : i32
    %c0_i32_1 = arith.constant 0 : i32
    return %c0_i32, %c0_i32_0 : i32, i32
  }
  func.func @transform_2(%arg0: i32) -> (i32, i32) {
    %c0_i32 = arith.constant 0 : i32
    %c0_i32_0 = arith.constant 0 : i32
    %c0_i32_1 = arith.constant 0 : i32
    return %c0_i32, %c0_i32_0 : i32, i32
  }
  func.func @transform_3(%arg0: i32) -> (i32, i32) {
    %c0_i32 = arith.constant 0 : i32
    %c0_i32_0 = arith.constant 0 : i32
    return %arg0, %c0_i32 : i32, i32
  }
}

</mosaic_0001>

<bundles_post_ra>
// kernel: tpu_custom_call.1
= control target key start
LH: loop header
LB: loop body
LE: loop exit
PB: predicated region body
PF: predicated region fallthrough
CT: control target
= control target key end

     0   :  { %8 = vsyncpa [#allocation3], 0  ;;  %s240_s0 = inlined_call_operand.hbm [shape: f32[8,128], index: 0, kind: input, shape index: {}]   ;;  %s241_s1 = inlined_call_operand.hbm [shape: f32[128,128], index: 1, kind: input, shape index: {}]   ;;  %s242_s2 = inlined_call_operand.vmem [shape: f32[1,128], index: 2, kind: input, shape index: {}]   ;;  %s243_s3 = inlined_call_operand.hbm [shape: f32[8,128], index: 3, kind: output, shape index: {}]  }
   0x1   :  { %9 = vsyncpa [#allocation6], 0 }
   0x2   :  { %10 = vsyncpa [#allocation4], 0  ;;  %s16_s14 = sshll.u32 %s240_s0, 4  ;;  %s203_s15 = smov [#allocation2]   ;;  %s17_s14 = int_to_ptr.hbm [resolvable:$true] %s16_s14 }
   0x3   :  { %s18_s16 = sshll.u32 %s203_s15, 4  ;;  %s26_s19 = sshll.u32 %s241_s1, 4  ;;  %s19_s16 = int_to_ptr.vmem [resolvable:$true] %s18_s16  ;;  %s27_s19 = int_to_ptr.hbm [resolvable:$true] %s26_s19 }
   0x4   :  { %21 = dma.hbm_to_vmem [thread:$0]  %s17_s14, 128, %s19_s16, [#allocation3]  }
   0x5   :  { %s204_s20 = smov [#allocation5]   ;;  %s205_s22 = smov 128  }
   0x6   :  { %s28_s21 = sshll.u32 %s204_s20, 4  ;;  %s206_s23 = smov 8   ;;  %s29_s21 = int_to_ptr.vmem [resolvable:$true] %s28_s21 }
   0x7   :  { %34 = dma.hbm_to_vmem [thread:$0]  %s27_s19, 2048, %s29_s21, [#allocation6], %s205_s22, %s205_s22, %s206_s23  }
   0x8   :  { %197 = dma.done.wait [#allocation3], 128  }
   0x9   :  { %198 = vsyncadd [#allocation3], 4294967168 }
   0xa   :  { %199 = dma.done.wait [#allocation6], 2048  }
   0xb   :  { %200 = vsyncadd [#allocation6], 4294965248  ;;  %v61_v0 = vld [vmem:[#allocation5 + $0x78] sm:$0xff]  ;;  %v60_v1 = vld [vmem:[#allocation5 + $0x70] sm:$0xff]  ;;  %s207_s24 = smov [#allocation7]   ;;  %s104_s28 = sshll.u32 %s243_s3, 4  ;;  %s105_s28 = int_to_ptr.hbm [resolvable:$true] %s104_s28 }
   0xc   :  { %66 = vmatpush.msra.mxu0 %v61_v0  ;;  %v59_v2 = vld [vmem:[#allocation5 + $0x68] sm:$0xff]  ;;  %v58_v3 = vld [vmem:[#allocation5 + $0x60] sm:$0xff]  ;;  %v57_v4 = vld [vmem:[#allocation5 + $0x58] sm:$0xff]  ;;  %s102_s25 = sshll.u32 %s207_s24, 4  ;;  %s103_s25 = int_to_ptr.vmem [resolvable:$true] %s102_s25 }
   0xd   :  { %v56_v5 = vld [vmem:[#allocation5 + $0x50] sm:$0xff]  ;;  %v55_v6 = vld [vmem:[#allocation5 + $0x48] sm:$0xff]  ;;  %v54_v7 = vld [vmem:[#allocation5 + $0x40] sm:$0xff] }
   0xe   :  { %67 = vmatpush.msra.mxu0 %v60_v1  ;;  %v53_v8 = vld [vmem:[#allocation5 + $0x38] sm:$0xff]  ;;  %v52_v9 = vld [vmem:[#allocation5 + $0x30] sm:$0xff]  ;;  %v51_v10 = vld [vmem:[#allocation5 + $0x28] sm:$0xff] }
   0xf   :  { %v50_v11 = vld [vmem:[#allocation5 + $0x20] sm:$0xff]  ;;  %v49_v12 = vld [vmem:[#allocation5 + $0x18] sm:$0xff]  ;;  %v48_v13 = vld [vmem:[#allocation5 + $0x10] sm:$0xff] }
  0x10   :  { %68 = vmatpush.msra.mxu0 %v59_v2  ;;  %v47_v14 = vld [vmem:[#allocation5 + $0x8] sm:$0xff]  ;;  %v46_v15 = vld [vmem:[#allocation5] sm:$0xff]  ;;  %v45_v16 = vld [vmem:[#allocation2] sm:$0xff] }
  0x11   :  { %v120_v17 = vld [vmem:[%s242_s2] ss:$0 sm:$0xff] }
  0x12   :  { %69 = vmatpush.msra.mxu0 %v58_v3 }
  0x14   :  { %70 = vmatpush.msra.mxu0 %v57_v4 }
  0x16   :  { %71 = vmatpush.msra.mxu0 %v56_v5 }
  0x18   :  { %72 = vmatpush.msra.mxu0 %v55_v6 }
  0x1a   :  { %73 = vmatpush.msra.mxu0 %v54_v7 }
  0x1c   :  { %74 = vmatpush.msra.mxu0 %v53_v8 }
  0x1e   :  { %75 = vmatpush.msra.mxu0 %v52_v9 }
  0x20   :  { %76 = vmatpush.msra.mxu0 %v51_v10 }
  0x22   :  { %77 = vmatpush.msra.mxu0 %v50_v11 }
  0x24   :  { %78 = vmatpush.msra.mxu0 %v49_v12 }
  0x26   :  { %79 = vmatpush.msra.mxu0 %v48_v13 }
  0x28   :  { %80 = vmatpush.msra.mxu0 %v47_v14 }
  0x2a   :  { %81 = vmatpush.msra.mxu0 %v46_v15 }
  0x2b   :  { %82 = vmatmul.f32.vlgmr.msra.gmra.mxu0 %v45_v16 }
  0xa8   :  { %v83_v18 = vpop.f32.mrf.mxu0 }
  0xa9   :  { %v84_v19 = vadd.f32 %v120_v17, %v83_v18 }
  0xab   :  { %86 = vmax.xlane.f32.xlu0 %v84_v19 }
 0x11e   :  { %v87_v20 = vpop.xlane.xlu0 %86 }
 0x11f   :  { %v88_v21 = vsub.f32 %v84_v19, %v87_v20 }
 0x121   :  { %v89_v22 = vmul.f32 1.442695, %v88_v21 }
 0x123   :  { %121 = vpow2.f32 %v89_v22 }
 0x129   :  { %v122_v23 = vpop.eup %121 }
 0x12a   :  { %91 = vadd.xlane.f32.xlu0 %v122_v23 }
 0x19d   :  { %v92_v24 = vpop.xlane.xlu0 %91 }
 0x19e   :  { %123 = vlog2.f32 %v92_v24 }
 0x1a4   :  { %v124_v25 = vpop.eup %123 }
 0x1a5   :  { %v94_v26 = vmul.f32 0.6931472, %v124_v25 }
 0x1a7   :  { %v95_v27 = vsub.f32 %v88_v21, %v94_v26 }
 0x1a9   :  { %96 = vst [vmem:[#allocation7] sm:$0xff] %v95_v27 }
 0x1aa   :  { %107 = dma.vmem_to_hbm [thread:$0]  %s103_s25, 128, %s105_s28, [#allocation4]  }
 0x1ab   :  { %201 = dma.done.wait [#allocation4], 128  }
 0x1ac   :  { %202 = vsyncadd [#allocation4], 4294967168 }
 0x1ad   :  { %112 = vsyncpa [#allocation3], 1 }
 0x1ae   :  { %113 = vsyncpa [#allocation6], 1 }
 0x1af   :  { %114 = vsyncpa [#allocation4], 1 }

</bundles_post_ra>
